<compile_context>
chip_gen: v5e
topology: v5e:2x2
jax: 0.10.0
libtpu: 0.0.40
codegen_flags: <defaults>
</compile_context>

<pallas_src>
import math

import jax
import jax.numpy as jnp
from jax.experimental import pallas as pl
from jax.experimental.pallas import tpu as pltpu

EPS = 1e-4

# Below this many elements, plain (XLA-fused) JAX beats the kernel launch cost.
_SMALL_FALLBACK_ELEMS = 64 * 1024

# Hard cap on elements per block so large maps still get several grid steps.
_MAX_BLOCK_ELEMS = 1 << 20  # 1M elems (4 MiB f32 / 2 MiB bf16 per array block)


def _sublane_multiple(itemsize):
    """Packed-sublane multiple for the dtype: f32->8, bf16->16, int8/fp8->32."""
    return max(8, 32 // max(1, itemsize))


def _vmem_plan():
    """(block_budget_bytes, vmem_limit_bytes), generation-aware."""
    try:
        cap = pltpu.get_tpu_info().vmem_capacity_bytes
    except Exception:
        cap = 64 * 1024 * 1024          # conservative: v7x per-TC capacity
    limit = min(64 * 1024 * 1024, cap // 2)   # scoped VMEM we request
    budget = (limit * 3) // 4                 # block budget with headroom
    return budget, limit


def _choose_layout(M, L, itemsize):
    """Pick (lanes, tile_rows, padded_rows, pad_elems) for a length-M map.

    Joint search over lane width and row tile. Preference order:
      1. grid >= 2            (pipelining: overlap store i with load i+1)
      2. no padding           (padding forces an extra full HBM round trip)
      3. even grid            (both v7x TensorCores busy)
      4. grid >= 4            (amortize per-step overhead)
      5. minimal padding, then fewest steps, then widest lanes.
    """
    sub = _sublane_multiple(itemsize)
    budget, _ = _vmem_plan()
    # Double-buffered (L inputs + 1 output) blocks must fit the budget.
    max_block_elems = min(_MAX_BLOCK_ELEMS,
                          max(sub * 128, budget // (2 * (L + 1) * itemsize)))

    best = None
    for lanes in (1024, 512, 256, 128):
        rows = pl.cdiv(M, lanes)
        max_rows = max(sub, (max_block_elems // lanes) // sub * sub)
        hi = min(max_rows, pl.cdiv(rows, sub) * sub)
        for tile in range(hi, sub - 1, -sub):
            grid = pl.cdiv(rows, tile)
            pad_elems = grid * tile * lanes - M
            key = (
                0 if grid >= 2 else 1,         # need >=2 steps for pipelining
                0 if pad_elems == 0 else 1,    # padding = extra HBM copy
                grid % 2,                      # even grid -> both v7x TCs
                0 if grid >= 4 else 1,         # a few steps amortize overhead
                pad_elems,
                grid,                          # then fewest steps
                -lanes,                        # then widest (lane-dense) tiles
            )
            if best is None or key < best[0]:
                best = (key, lanes, tile, grid)

    _, lanes, tile_rows, grid = best
    padded_rows = grid * tile_rows
    pad_elems = padded_rows * lanes - M
    return lanes, tile_rows, padded_rows, pad_elems


def _make_bifpn_kernel(L):
    def kernel(nw_ref, *refs):
        """nw_ref : SMEM (L,) f32 pre-normalized fusion weights (scalar prefetch)
           refs[:L]: VMEM (tile_rows, lanes) feature-map tiles (native dtype)
           refs[L] : VMEM (tile_rows, lanes) fused output tile (native dtype)
        """
        x_refs = refs[:L]
        o_ref = refs[L]
        acc = x_refs[0][...].astype(jnp.float32) * nw_ref[0]
        for i in range(1, L):                   # L small & static -> unrolled
            acc = acc + x_refs[i][...].astype(jnp.float32) * nw_ref[i]
        o_ref[...] = acc.astype(o_ref.dtype)
    return kernel


def bifpn_forward(weight, feats):
    """weight: (L,) f32; feats: list of L arrays with identical shape (NCHW)."""
    L = len(feats)
    assert weight.shape == (L,)
    orig_shape = feats[0].shape
    dtype = feats[0].dtype
    itemsize = jnp.dtype(dtype).itemsize
    M = math.prod(orig_shape)

    # Hoisted normalization: touches only the (L,) weight vector (cheap).
    w = weight.astype(jnp.float32)
    norm_w = w / (jnp.sum(w * jax.nn.sigmoid(w)) + jnp.float32(EPS))

    # Tiny maps: the pallas_call launch + DMA prologue dwarfs the data
    # movement; XLA's fused elementwise is strictly faster here.
    if M < _SMALL_FALLBACK_ELEMS:
        acc = norm_w[0] * feats[0].astype(jnp.float32)
        for i in range(1, L):
            acc = acc + norm_w[i] * feats[i].astype(jnp.float32)
        return acc.astype(dtype)

    lanes, tile_rows, padded_rows, pad_elems = _choose_layout(M, L, itemsize)
    _, vmem_limit = _vmem_plan()

    # Flatten each map to its own lane-dense (rows, lanes) slab. When the
    # layout search found a no-pad layout (the common case for NCHW maps)
    # this reshape is free -- no stack copy, no pad copy, no dtype upcast.
    xs = []
    for f in feats:
        flat = f.reshape(-1)
        if pad_elems:
            # TODO(synk): handle the ragged tail with memory_space=pl.ANY +
            # manual make_async_copy instead of materializing a padded copy.
            flat = jnp.pad(flat, (0, pad_elems))
        xs.append(flat.reshape(padded_rows, lanes))

    grid = (padded_rows // tile_rows,)
    block = (tile_rows, lanes)
    idx = lambda r, nw: (r, 0)

    cost = pl.CostEstimate(
        flops=2 * L * padded_rows * lanes,
        transcendentals=0,
        bytes_accessed=(L + 1) * padded_rows * lanes * itemsize + L * 4,
    )

    out = pl.pallas_call(
        _make_bifpn_kernel(L),
        out_shape=jax.ShapeDtypeStruct((padded_rows, lanes), dtype),
        grid_spec=pltpu.PrefetchScalarGridSpec(
            num_scalar_prefetch=1,             # normalized weights -> SMEM
            grid=grid,
            in_specs=[pl.BlockSpec(block, idx) for _ in range(L)],
            out_specs=pl.BlockSpec(block, idx),
        ),
        compiler_params=pltpu.CompilerParams(
            dimension_semantics=("parallel",),
            vmem_limit_bytes=vmem_limit,
        ),
        cost_estimate=cost,
    )(norm_w, *xs)

    if pad_elems:
        out = out.reshape(-1)[:M]
    return out.reshape(orig_shape)


def bifpn_ref(weight, feats):
    """Pure-JAX reference mirroring the PyTorch forward."""
    swish_w = weight * jax.nn.sigmoid(weight)
    weights = weight / (jnp.sum(swish_w) + EPS)
    stacked = jnp.stack([weights[i] * feats[i] for i in range(len(feats))], 0)
    return jnp.sum(stacked, axis=0)


if __name__ == "__main__":
    key = jax.random.PRNGKey(0)
    L = 3                           # BiFPN(length=3)
    weight = jnp.ones((L,), dtype=jnp.float32)  # nn.Parameter(torch.ones(L))

    # Case 1: tiny NCHW maps -> plain-JAX fallback path (per perf review).
    B, C, H, W = 2, 4, 16, 16
    keys = jax.random.split(key, 2 * L)
    feats_small = [jax.random.normal(keys[i], (B, C, H, W), dtype=jnp.float32)
                   for i in range(L)]
    out_small = jax.block_until_ready(bifpn_forward(weight, feats_small))
    ref_small = bifpn_ref(weight, feats_small)
    assert out_small.shape == (B, C, H, W)
    assert out_small.dtype == feats_small[0].dtype
    assert jnp.allclose(out_small, ref_small, atol=1e-5, rtol=1e-5)

    # Case 2: a modest feature-map size that exercises the Pallas kernel
    # (lane-dense layout, >=4 even grid steps, no padding).
    B2, C2, H2, W2 = 2, 8, 80, 80
    feats_big = [jax.random.normal(keys[L + i], (B2, C2, H2, W2),
                                   dtype=jnp.float32) for i in range(L)]
    out_big = jax.block_until_ready(bifpn_forward(weight, feats_big))
    ref_big = bifpn_ref(weight, feats_big)
    assert out_big.shape == (B2, C2, H2, W2)
    assert out_big.dtype == feats_big[0].dtype
    assert jnp.allclose(out_big, ref_big, atol=1e-5, rtol=1e-5)

    print("KERNEL_OK")
</pallas_src>

<mosaic_0001>
module attributes {stable_mosaic.version = 11 : i64} {
  func.func @kernel(%arg0: i32, %arg1: memref<3xf32, #tpu.memory_space<smem>>, %arg2: memref<200x128xf32, #tpu.memory_space<vmem>>, %arg3: memref<200x128xf32, #tpu.memory_space<vmem>>, %arg4: memref<200x128xf32, #tpu.memory_space<vmem>>, %arg5: memref<200x128xf32, #tpu.memory_space<vmem>>) attributes {dimension_semantics = [#tpu.dimension_semantics<parallel>], iteration_bounds = array<i64: 4>, scalar_prefetch = 1 : i64, scratch_operands = 0 : i64, tpu.core_type = #tpu.core_type<tc>, window_params = [{transform_indices = @transform_0, window_bounds = array<i64: 200, 128>}, {transform_indices = @transform_1, window_bounds = array<i64: 200, 128>}, {transform_indices = @transform_2, window_bounds = array<i64: 200, 128>}, {transform_indices = @transform_3, window_bounds = array<i64: 200, 128>}]} {
    %c0 = arith.constant 0 : index
    %c0_0 = arith.constant 0 : index
    %0 = vector.load %arg2[%c0, %c0_0] : memref<200x128xf32, #tpu.memory_space<vmem>>, vector<200x128xf32>
    %c0_1 = arith.constant 0 : index
    %1 = memref.load %arg1[%c0_1] : memref<3xf32, #tpu.memory_space<smem>>
    %2 = vector.broadcast %1 : f32 to vector<200x128xf32>
    %3 = arith.mulf %0, %2 : vector<200x128xf32>
    %c0_2 = arith.constant 0 : index
    %c0_3 = arith.constant 0 : index
    %4 = vector.load %arg3[%c0_2, %c0_3] : memref<200x128xf32, #tpu.memory_space<vmem>>, vector<200x128xf32>
    %c1 = arith.constant 1 : index
    %5 = memref.load %arg1[%c1] : memref<3xf32, #tpu.memory_space<smem>>
    %6 = vector.broadcast %5 : f32 to vector<200x128xf32>
    %7 = arith.mulf %4, %6 : vector<200x128xf32>
    %8 = arith.addf %3, %7 : vector<200x128xf32>
    %c0_4 = arith.constant 0 : index
    %c0_5 = arith.constant 0 : index
    %9 = vector.load %arg4[%c0_4, %c0_5] : memref<200x128xf32, #tpu.memory_space<vmem>>, vector<200x128xf32>
    %c2 = arith.constant 2 : index
    %10 = memref.load %arg1[%c2] : memref<3xf32, #tpu.memory_space<smem>>
    %11 = vector.broadcast %10 : f32 to vector<200x128xf32>
    %12 = arith.mulf %9, %11 : vector<200x128xf32>
    %13 = arith.addf %8, %12 : vector<200x128xf32>
    %c0_6 = arith.constant 0 : index
    %c0_7 = arith.constant 0 : index
    %14 = vector.load %arg5[%c0_6, %c0_7] : memref<200x128xf32, #tpu.memory_space<vmem>>, vector<200x128xf32>
    tpu.vector_store %arg5[%c0_6, %c0_7], %13 {strides = array<i32>} : memref<200x128xf32, #tpu.memory_space<vmem>>, vector<200x128xf32>,
    return
  }
  func.func @transform_0(%arg0: i32, %arg1: memref<3xf32, #tpu.memory_space<smem>>) -> (i32, i32) {
    %c0_i32 = arith.constant 0 : i32
    %c0_i32_0 = arith.constant 0 : i32
    return %arg0, %c0_i32 : i32, i32
  }
  func.func @transform_1(%arg0: i32, %arg1: memref<3xf32, #tpu.memory_space<smem>>) -> (i32, i32) {
    %c0_i32 = arith.constant 0 : i32
    %c0_i32_0 = arith.constant 0 : i32
    return %arg0, %c0_i32 : i32, i32
  }
  func.func @transform_2(%arg0: i32, %arg1: memref<3xf32, #tpu.memory_space<smem>>) -> (i32, i32) {
    %c0_i32 = arith.constant 0 : i32
    %c0_i32_0 = arith.constant 0 : i32
    return %arg0, %c0_i32 : i32, i32
  }
  func.func @transform_3(%arg0: i32, %arg1: memref<3xf32, #tpu.memory_space<smem>>) -> (i32, i32) {
    %c0_i32 = arith.constant 0 : i32
    %c0_i32_0 = arith.constant 0 : i32
    return %arg0, %c0_i32 : i32, i32
  }
}

</mosaic_0001>

<bundles_post_ra>
// kernel: tpu_custom_call.1
= control target key start
LH: loop header
LB: loop body
LE: loop exit
PB: predicated region body
PF: predicated region fallthrough
CT: control target
= control target key end

     0   :  { %s905_s18 = smov [#allocation3]   ;;  %s1321_s0 = inlined_call_operand.hbm [shape: f32[3], index: 0, kind: input, shape index: {}]   ;;  %s1322_s1 = inlined_call_operand.hbm [shape: f32[800,128], index: 1, kind: input, shape index: {}]   ;;  %s1323_s2 = inlined_call_operand.hbm [shape: f32[800,128], index: 2, kind: input, shape index: {}]   ;;  %s1324_s3 = inlined_call_operand.hbm [shape: f32[800,128], index: 3, kind: input, shape index: {}]   ;;  %s1325_s4 = inlined_call_operand.hbm [shape: f32[800,128], index: 4, kind: output, shape index: {}]  }
   0x1   :  { %1328 = sst [smem:[#allocation16_spill]] %s1322_s1  ;;  %s10_s17 = sshll.u32 %s1321_s0, 4  ;;  %s11_s17 = int_to_ptr.hbm [resolvable:$true] %s10_s17 }
   0x2   :  { %1329 = sst [smem:[#allocation17_spill]] %s1323_s2 }
   0x3   :  { %13 = dma.hbm_to_smem %s11_s17, 16, %s905_s18, [#allocation2] }
   0x4   :  { %875 = dma.done.wait [#allocation2], 16 }
   0x5   :  { %876 = vsyncadd [#allocation2], 4294967280 }
   0x6   :  { %16 = sfence }
   0x7   :  { %17 = vsyncpa [#allocation5], 0 }
   0x8   :  { %19 = vsyncpa [#allocation5 + $0x1], 0 }
   0x9   :  { %20 = vsyncpa [#allocation8], 0 }
   0xa   :  { %22 = vsyncpa [#allocation8 + $0x1], 0 }
   0xb   :  { %23 = vsyncpa [#allocation6], 0 }
   0xc   :  { %25 = vsyncpa [#allocation6 + $0x1], 0  ;;  %s938_s19 = smov 0   ;;  %s940_s20 = smov 0  }
   0xd   :  { %s942_s21 = smov 0   ;;  %s944_s22 = smov 0  }
   0xe LB: > { %s959_s0 = sadd.s32 4294967295, %s903_s22   ;;  %s648_s23 = sadd.s32 4294967294, %s903_s22   ;;  %s903_s22 = sphi %s944_s22, %s1343_s22   ;;  %s899_s21 = sphi %s942_s21, %s1342_s21   ;;  %s895_s20 = sphi %s940_s20, %s1341_s20   ;;  %s891_s19 = sphi %s938_s19, %s1340_s19  }
   0xf   : > { %s963_s24 = sadd.s32 1, %s903_s22   ;;  %s38_s25 = sadd.s32 1, %s899_s21 }
  0x10   : > { %s35_s26 = ssub.s32 %s903_s22, %s963_s24  ;;  %p45_p0 = scmp.ne.s32.totalorder %s899_s21, %s895_s20 }
  0x11   : > { %p36_p1 = scmp.eq.s32.totalorder %s35_s26, 0  ;;  %p46_p2 = scmp.eq.s32.totalorder %s903_s22, 0 }
  0x12   : > { %p51_p3 = scmp.ne.s32.totalorder %s895_s20, %s891_s19  ;;  %p52_p4 = scmp.eq.s32.totalorder %s959_s0, 0 }
  0x13   : > { %s975_s27 = scalar_select %p36_p1, %s899_s21, %s38_s25  }
  0x14   : > { %p47_p5 = por %p46_p2, %p45_p0  ;;  %p977_p6 = por %p52_p4, %p51_p3 }
  0x15   : > { %1330 = sst [smem:[#allocation15_spill]] %s975_s27  ;;  %p127_p7 = scmp.eq.s32.totalorder %s959_s0, 3 }
  0x16   : > { %p133_p8 = scmp.eq.s32.totalorder %s648_s23, 3  ;;  %p690_p9 = scmp.lt.s32.totalorder %s903_s22, 4 }
  0x17   : > { %p983_p10 = por %p127_p7, %p45_p0  ;;  %s153_s5 = sand.u32 1, %s899_s21  }
  0x18   : > { %p987_p11 = por %p133_p8, %p51_p3  ;;  %s993_s6 = smul.u32 200, %s903_s22 }
  0x19   : > { %s997_s7 = smul.u32 200, %s153_s5  ;;  %p999_p12 = pnand %p690_p9, %p47_p5 }
  0x1a   : > { %s175_s9 = sand.u32 1, %s903_s22   ;;  %s1335_s2 = sld [smem:[#allocation17_spill]] }
  0x1b   : > { %s179_s13 = scalar_lea.vmem [#allocation7], %s997_s7  ;;  %p654_p13 = scmp.ge.s32.totalorder %s903_s22, 1 }
  0x1c   : > { %s187_s14 = sshll.u32 %s179_s13, 4  ;;  %s1010_s16 = scalar_lea.sflag [#allocation8], %s175_s9  ;;  %s188_s14 = int_to_ptr.vmem [resolvable:$true] %s187_s14 }
  0x1d   : > { %p745_p1 = pneg %p999_p12 }
  0x20   : > { %s184_s12 = scalar_lea.hbm %s1335_s2, %s993_s6  ;;  %s748_s26 = scalar_lea.hbm %s1335_s2, 800 }
  0x21   : > { %s185_s15 = sshll.u32 %s184_s12, 4  ;;  %s186_s15 = int_to_ptr.hbm [resolvable:$true] %s185_s15 }
  0x22   : > { %s741_s17 = sshra.s32 %s186_s15, 4  ;;  %s742_s17 = int_to_ptr.hbm [resolvable:$true] %s741_s17 }
  0x23   : > { %s743_s18 = scalar_lea.hbm %s742_s17, 200  ;;  %p749_p4 = scmp.lt.s32.totalorder %s742_s17, %s1335_s2 }
  0x24   : > { %p744_p0 = scmp.ne.s32.totalorder %s742_s17, %s743_s18  ;;  %p750_p5 = scmp.lt.s32.totalorder %s748_s26, %s743_s18 }
  0x26   : > { %p746_p2 = pnand %p745_p1, %p744_p0  ;;  %p751_p7 = por %p750_p5, %p749_p4 }
  0x28   : > { %p747_p3 = pneg %p746_p2 }
  0x2a   : > { %p752_p8 = pnand %p751_p7, %p747_p3 }
  0x2c   : > { %755 = shalt.err (!%p752_p8)
}
  0x2d   : > { %s1326_s9 = smov 128   ;;  %s907_s12 = smov 8  }
  0x2e   : > { %682 = dma.hbm_to_vmem [thread:$0]  (!%p999_p12), %s186_s15, 3200, %s188_s14, %s1010_s16, %s1326_s9, %s1326_s9, %s907_s12  }
  0x2f   : > { %p217_p9 = scmp.lt.s32.totalorder %s903_s22, 5  ;;  %s1336_s1 = sld [smem:[#allocation16_spill]] }
  0x30   : > { %s157_s26 = scalar_lea.vmem [#allocation4], %s997_s7  ;;  %s154_s11 = scalar_lea.sflag [#allocation5], %s153_s5 }
  0x31   : > { %p1036_p0 = pnand %p654_p13, %p217_p9  ;;  %s165_s10 = sshll.u32 %s157_s26, 4  ;;  %s166_s10 = int_to_ptr.vmem [resolvable:$true] %s165_s10 }
  0x35   : > { %s162_s18 = scalar_lea.hbm %s1336_s1, %s993_s6  ;;  %s778_s17 = scalar_lea.hbm %s1336_s1, 800 }
  0x36   : > { %s163_s25 = sshll.u32 %s162_s18, 4  ;;  %s164_s25 = int_to_ptr.hbm [resolvable:$true] %s163_s25 }
  0x37   : > { %s771_s2 = sshra.s32 %s164_s25, 4  ;;  %s772_s2 = int_to_ptr.hbm [resolvable:$true] %s771_s2 }
  0x38   : > { %s773_s14 = scalar_lea.hbm %s772_s2, 200  ;;  %p779_p13 = scmp.lt.s32.totalorder %s772_s2, %s1336_s1 }
  0x39   : > { %p774_p2 = scmp.ne.s32.totalorder %s772_s2, %s773_s14  ;;  %p780_p5 = scmp.lt.s32.totalorder %s778_s17, %s773_s14 }
  0x3b   : > { %p776_p3 = pnand %p774_p2, %p745_p1  ;;  %p781_p7 = por %p780_p5, %p779_p13 }
  0x3d   : > { %p777_p4 = pneg %p776_p3 }
  0x3f   : > { %p782_p8 = pnand %p781_p7, %p777_p4 }
  0x41   : > { %785 = shalt.err (!%p782_p8)
}
  0x42   : > { %s1338_s5 = smov 128   ;;  %s206_s13 = scalar_lea.hbm %s1324_s3, %s993_s6 }
  0x43   : > { %679 = dma.hbm_to_vmem [thread:$0]  (!%p999_p12), %s164_s25, 3200, %s166_s10, %s154_s11, %s1338_s5, %s1338_s5, %s907_s12  }
  0x44   : > { %s201_s27 = scalar_lea.vmem [#allocation9], %s997_s7  ;;  %s207_s2 = sshll.u32 %s206_s13, 4  ;;  %s208_s2 = int_to_ptr.hbm [resolvable:$true] %s207_s2 }
  0x45   : > { %s209_s9 = sshll.u32 %s201_s27, 4  ;;  %s801_s14 = sshra.s32 %s208_s2, 4  ;;  %s210_s9 = int_to_ptr.vmem [resolvable:$true] %s209_s9  ;;  %s802_s14 = int_to_ptr.hbm [resolvable:$true] %s801_s14 }
  0x46   : > { %s803_s17 = scalar_lea.hbm %s802_s14, 200  ;;  %s808_s25 = scalar_lea.hbm %s1324_s3, 800 }
  0x47   : > { %p804_p9 = scmp.ne.s32.totalorder %s802_s14, %s803_s17  ;;  %p809_p4 = scmp.lt.s32.totalorder %s802_s14, %s1324_s3 }
  0x48   : > { %p810_p13 = scmp.lt.s32.totalorder %s808_s25, %s803_s17 }
  0x49   : > { %p806_p2 = pnand %p804_p9, %p745_p1 }
  0x4a   : > { %p811_p5 = por %p810_p13, %p809_p4 }
  0x4b   : > { %p807_p3 = pneg %p806_p2 }
  0x4d   : > { %p812_p7 = pnand %p811_p5, %p807_p3 }
  0x4f   : > { %815 = shalt.err (!%p812_p7)
}
  0x50   : > { %685 = dma.hbm_to_vmem [thread:$0]  (!%p999_p12), %s208_s2, 3200, %s210_s9, %s1010_s16, %s1338_s5, %s1338_s5, %s907_s12  }
  0x51   : > { %221 = sbr.rel (%p1036_p0) target bundleno = 136 (0x88), region = 32  ;;  %s1080_s1 = sand.u32 (!%p1036_p0), 1, %s895_s20  }
  0x52   : > { %s1083_s27 = smul.u32 (!%p1036_p0), 200, %s1080_s1  ;;  %s224_s6 = scalar_lea.sflag (!%p1036_p0), [#allocation5], %s1080_s1 }
  0x54   : > { %s1087_s7 = scalar_lea.vmem (!%p1036_p0), [#allocation4], %s1083_s27 }
  0x56   : > { %878 = dma.done.wait (%p977_p6), %s224_s6, 3200  }
  0x57   : > { %880 = vsyncadd (%p977_p6), %s224_s6, 4294964096  ;;  %s233_s8 = sand.u32 1, %s959_s0   ;;  %s1095_s12 = scalar_lea.vmem [#allocation7], %s1083_s27 }
  0x58   : > { %s234_s16 = scalar_lea.sflag [#allocation8], %s233_s8 }
  0x59   : > { %882 = dma.done.wait (%p977_p6), %s234_s16, 6400  }
  0x5a   : > { %884 = vsyncadd (%p977_p6), %s234_s16, 4294960896  ;;  %s310_s23 = sld [smem:[#allocation3]]  ;;  %v285_v0 = vld [vmem:[%s1087_s7] sm:$0xff]  ;;  %v337_v2 = vld [vmem:[%s1095_s12] sm:$0xff]  ;;  %s1106_s15 = scalar_lea.vmem [#allocation9], %s1083_s27 }
  0x5b   : > { %s655_s5 = sld [smem:[#allocation3 + $0x1]]  ;;  %v414_v3 = vld [vmem:[%s1106_s15] sm:$0xff]  ;;  %v286_v6 = vld [vmem:[%s1087_s7 + $0x8] sm:$0xff]  ;;  %v338_v7 = vld [vmem:[%s1095_s12 + $0x8] sm:$0xff]  ;;  %s1152_s28 = scalar_lea.vmem [#allocation10], %s1083_s27 }
  0x5c   : > { %s656_s26 = sld [smem:[#allocation3 + $0x2]]  ;;  %v415_v8 = vld [vmem:[%s1106_s15 + $0x8] sm:$0xff]  ;;  %v287_v13 = vld [vmem:[%s1087_s7 + $0x10] sm:$0xff]  ;;  %v339_v14 = vld [vmem:[%s1095_s12 + $0x10] sm:$0xff]  ;;  %s663_s13 = smul.u32 200, %s959_s0 }
  0x5d   : > { %v416_v15 = vld [vmem:[%s1106_s15 + $0x10] sm:$0xff]  ;;  %v288_v20 = vld [vmem:[%s1087_s7 + $0x18] sm:$0xff]  ;;  %v340_v21 = vld [vmem:[%s1095_s12 + $0x18] sm:$0xff]  ;;  %s529_s14 = sshll.u32 %s1152_s28, 4  ;;  %s517_s18 = scalar_lea.sflag [#allocation6], %s1080_s1  ;;  %s530_s14 = int_to_ptr.vmem [resolvable:$true] %s529_s14 }
  0x5e   : > { %v417_v22 = vld [vmem:[%s1106_s15 + $0x18] sm:$0xff]  ;;  %v289_v27 = vld [vmem:[%s1087_s7 + $0x20] sm:$0xff]  ;;  %v341_v28 = vld [vmem:[%s1095_s12 + $0x20] sm:$0xff]  ;;  %s528_s2 = scalar_lea.hbm %s1325_s4, %s663_s13  ;;  %s851_s6 = scalar_lea.hbm %s1325_s4, 800 }
  0x5f   : > { %v418_v29 = vld [vmem:[%s1106_s15 + $0x20] sm:$0xff]  ;;  %v290_v34 = vld [vmem:[%s1087_s7 + $0x28] sm:$0xff]  ;;  %v342_v35 = vld [vmem:[%s1095_s12 + $0x28] sm:$0xff]  ;;  %s531_s17 = sshll.u32 %s528_s2, 4  ;;  %s532_s17 = int_to_ptr.hbm [resolvable:$true] %s531_s17 }
  0x60   : > { %v1102_v1 = vstv %s310_s23  ;;  %v419_v36 = vld [vmem:[%s1106_s15 + $0x28] sm:$0xff]  ;;  %v291_v41 = vld [vmem:[%s1087_s7 + $0x30] sm:$0xff]  ;;  %v343_v42 = vld [vmem:[%s1095_s12 + $0x30] sm:$0xff]  ;;  %s845_s25 = sshra.s32 %s532_s17, 4  ;;  %s846_s25 = int_to_ptr.hbm [resolvable:$true] %s845_s25 }
  0x61   : > { %v312_v4 = vmul.f32 %v1102_v1, %v285_v0  ;;  %v1110_v5 = vstv %s655_s5  ;;  %v313_v11 = vmul.f32 %v1102_v1, %v286_v6  ;;  %v314_v18 = vmul.f32 %v1102_v1, %v287_v13  ;;  %v420_v43 = vld [vmem:[%s1106_s15 + $0x30] sm:$0xff]  ;;  %v292_v48 = vld [vmem:[%s1087_s7 + $0x38] sm:$0xff]  ;;  %v344_v49 = vld [vmem:[%s1095_s12 + $0x38] sm:$0xff]  ;;  %s847_s10 = scalar_lea.hbm %s846_s25, 200  ;;  %p852_p0 = scmp.lt.s32.totalorder %s846_s25, %s1325_s4 }
  0x62   : > { %v364_v9 = vmul.f32 %v1110_v5, %v337_v2  ;;  %v1116_v10 = vstv %s656_s26  ;;  %v365_v12 = vmul.f32 %v1110_v5, %v338_v7  ;;  %v366_v19 = vmul.f32 %v1110_v5, %v339_v14  ;;  %v421_v50 = vld [vmem:[%s1106_s15 + $0x38] sm:$0xff]  ;;  %v293_v55 = vld [vmem:[%s1087_s7 + $0x40] sm:$0xff]  ;;  %v345_v56 = vld [vmem:[%s1095_s12 + $0x40] sm:$0xff]  ;;  %p848_p6 = scmp.ne.s32.totalorder %s846_s25, %s847_s10  ;;  %p853_p8 = scmp.lt.s32.totalorder %s851_s6, %s847_s10 }
  0x63   : > { %v441_v16 = vmul.f32 %v1116_v10, %v414_v3  ;;  %v442_v17 = vmul.f32 %v1116_v10, %v415_v8  ;;  %v443_v25 = vmul.f32 %v1116_v10, %v416_v15  ;;  %v315_v26 = vmul.f32 %v1102_v1, %v288_v20  ;;  %v422_v57 = vld [vmem:[%s1106_s15 + $0x40] sm:$0xff]  ;;  %v294_v62 = vld [vmem:[%s1087_s7 + $0x48] sm:$0xff]  ;;  %v346_v63 = vld [vmem:[%s1095_s12 + $0x48] sm:$0xff] }
  0x64   : > { %v389_v23 = vadd.f32 %v364_v9, %v312_v4  ;;  %v390_v24 = vadd.f32 %v365_v12, %v313_v11  ;;  %v391_v30 = vadd.f32 %v366_v19, %v314_v18  ;;  %v367_v31 = vmul.f32 %v1110_v5, %v340_v21  ;;  %v423_v6 = vld [vmem:[%s1106_s15 + $0x48] sm:$0xff]  ;;  %v295_v7 = vld [vmem:[%s1087_s7 + $0x50] sm:$0xff]  ;;  %v347_v8 = vld [vmem:[%s1095_s12 + $0x50] sm:$0xff]  ;;  %p849_p12 = pnand %p848_p6, %p983_p10  ;;  %p854_p9 = por %p853_p8, %p852_p0 }
  0x65   : > { %v444_v32 = vmul.f32 %v1116_v10, %v417_v22  ;;  %v316_v33 = vmul.f32 %v1102_v1, %v289_v27  ;;  %v368_v39 = vmul.f32 %v1110_v5, %v341_v28  ;;  %v445_v40 = vmul.f32 %v1116_v10, %v418_v29  ;;  %v424_v14 = vld [vmem:[%s1106_s15 + $0x50] sm:$0xff]  ;;  %v296_v15 = vld [vmem:[%s1087_s7 + $0x58] sm:$0xff]  ;;  %v348_v20 = vld [vmem:[%s1095_s12 + $0x58] sm:$0xff] }
  0x66   : > { %v466_v37 = vadd.f32 %v441_v16, %v389_v23  ;;  %v467_v38 = vadd.f32 %v442_v17, %v390_v24  ;;  %v468_v44 = vadd.f32 %v443_v25, %v391_v30  ;;  %v392_v45 = vadd.f32 %v367_v31, %v315_v26  ;;  %v425_v21 = vld [vmem:[%s1106_s15 + $0x58] sm:$0xff]  ;;  %v297_v26 = vld [vmem:[%s1087_s7 + $0x60] sm:$0xff]  ;;  %v349_v27 = vld [vmem:[%s1095_s12 + $0x60] sm:$0xff]  ;;  %p850_p1 = pneg %p849_p12 }
  0x67   : > { %v317_v46 = vmul.f32 %v1102_v1, %v290_v34  ;;  %v369_v47 = vmul.f32 %v1110_v5, %v342_v35  ;;  %v393_v51 = vadd.f32 %v368_v39, %v316_v33  ;;  %v446_v52 = vmul.f32 %v1116_v10, %v419_v36  ;;  %v426_v28 = vld [vmem:[%s1106_s15 + $0x60] sm:$0xff]  ;;  %v298_v33 = vld [vmem:[%s1087_s7 + $0x68] sm:$0xff]  ;;  %v350_v34 = vld [vmem:[%s1095_s12 + $0x68] sm:$0xff] }
  0x68   : > { %491 = vst [vmem:[%s1152_s28] sm:$0xff] %v466_v37  ;;  %v318_v53 = vmul.f32 %v1102_v1, %v291_v41  ;;  %v370_v54 = vmul.f32 %v1110_v5, %v343_v42  ;;  %v469_v58 = vadd.f32 %v444_v32, %v392_v45  ;;  %v447_v60 = vmul.f32 %v1116_v10, %v420_v43  ;;  %v427_v39 = vld [vmem:[%s1106_s15 + $0x68] sm:$0xff]  ;;  %v351_v41 = vld [vmem:[%s1095_s12 + $0x70] sm:$0xff]  ;;  %p855_p2 = pnand %p854_p9, %p850_p1 }
  0x69   : > { %492 = vst [vmem:[%s1152_s28 + $0x8] sm:$0xff] %v467_v38  ;;  %v394_v59 = vadd.f32 %v369_v47, %v317_v46  ;;  %v319_v61 = vmul.f32 %v1102_v1, %v292_v48  ;;  %v470_v0 = vadd.f32 %v445_v40, %v393_v51  ;;  %v371_v3 = vmul.f32 %v1110_v5, %v344_v49  ;;  %v299_v40 = vld [vmem:[%s1087_s7 + $0x70] sm:$0xff]  ;;  %v300_v47 = vld [vmem:[%s1087_s7 + $0x78] sm:$0xff] }
  0x6a   : > { %493 = vst [vmem:[%s1152_s28 + $0x10] sm:$0xff] %v468_v44  ;;  %v395_v2 = vadd.f32 %v370_v54, %v318_v53  ;;  %v448_v4 = vmul.f32 %v1116_v10, %v421_v50  ;;  %v320_v11 = vmul.f32 %v1102_v1, %v293_v55  ;;  %v372_v12 = vmul.f32 %v1110_v5, %v345_v56  ;;  %v428_v46 = vld [vmem:[%s1106_s15 + $0x70] sm:$0xff]  ;;  %v429_v53 = vld [vmem:[%s1106_s15 + $0x78] sm:$0xff] }
  0x6b   : > { %494 = vst [vmem:[%s1152_s28 + $0x18] sm:$0xff] %v469_v58  ;;  %v471_v9 = vadd.f32 %v446_v52, %v394_v59  ;;  %v449_v13 = vmul.f32 %v1116_v10, %v422_v57  ;;  %v396_v17 = vadd.f32 %v371_v3, %v319_v61  ;;  %v321_v18 = vmul.f32 %v1102_v1, %v294_v62  ;;  %v352_v52 = vld [vmem:[%s1095_s12 + $0x78] sm:$0xff]  ;;  %v301_v58 = vld [vmem:[%s1087_s7 + $0x80] sm:$0xff]  ;;  %v353_v59 = vld [vmem:[%s1095_s12 + $0x80] sm:$0xff] }
  0x6c   : > { %495 = vst [vmem:[%s1152_s28 + $0x20] sm:$0xff] %v470_v0  ;;  %v472_v16 = vadd.f32 %v447_v60, %v395_v2  ;;  %v373_v19 = vmul.f32 %v1110_v5, %v346_v63  ;;  %v397_v22 = vadd.f32 %v372_v12, %v320_v11  ;;  %v450_v23 = vmul.f32 %v1116_v10, %v423_v6  ;;  %v430_v60 = vld [vmem:[%s1106_s15 + $0x80] sm:$0xff]  ;;  %v302_v2 = vld [vmem:[%s1087_s7 + $0x88] sm:$0xff]  ;;  %v354_v3 = vld [vmem:[%s1095_s12 + $0x88] sm:$0xff] }
  0x6d   : > { %496 = vst [vmem:[%s1152_s28 + $0x28] sm:$0xff] %v471_v9  ;;  %v322_v24 = vmul.f32 %v1102_v1, %v295_v7  ;;  %v374_v25 = vmul.f32 %v1110_v5, %v347_v8  ;;  %v473_v29 = vadd.f32 %v448_v4, %v396_v17  ;;  %v451_v31 = vmul.f32 %v1116_v10, %v424_v14  ;;  %v431_v9 = vld [vmem:[%s1106_s15 + $0x88] sm:$0xff]  ;;  %v303_v11 = vld [vmem:[%s1087_s7 + $0x90] sm:$0xff]  ;;  %v355_v12 = vld [vmem:[%s1095_s12 + $0x90] sm:$0xff] }
  0x6e   : > { %497 = vst [vmem:[%s1152_s28 + $0x30] sm:$0xff] %v472_v16  ;;  %v398_v30 = vadd.f32 %v373_v19, %v321_v18  ;;  %v323_v32 = vmul.f32 %v1102_v1, %v296_v15  ;;  %v474_v35 = vadd.f32 %v449_v13, %v397_v22  ;;  %v375_v37 = vmul.f32 %v1110_v5, %v348_v20  ;;  %v432_v17 = vld [vmem:[%s1106_s15 + $0x90] sm:$0xff]  ;;  %v304_v18 = vld [vmem:[%s1087_s7 + $0x98] sm:$0xff] }
  0x6f   : > { %v399_v36 = vadd.f32 %v374_v25, %v322_v24  ;;  %v452_v38 = vmul.f32 %v1116_v10, %v425_v21  ;;  %498 = vst [vmem:[%s1152_s28 + $0x38] sm:$0xff] %v473_v29  ;;  %v324_v43 = vmul.f32 %v1102_v1, %v297_v26  ;;  %v376_v44 = vmul.f32 %v1110_v5, %v349_v27  ;;  %v433_v24 = vld [vmem:[%s1106_s15 + $0x98] sm:$0xff]  ;;  %v305_v29 = vld [vmem:[%s1087_s7 + $0xa0] sm:$0xff] }
  0x70   : > { %v475_v42 = vadd.f32 %v450_v23, %v398_v30  ;;  %v453_v45 = vmul.f32 %v1116_v10, %v426_v28  ;;  %499 = vst [vmem:[%s1152_s28 + $0x40] sm:$0xff] %v474_v35  ;;  %v400_v49 = vadd.f32 %v375_v37, %v323_v32  ;;  %v325_v50 = vmul.f32 %v1102_v1, %v298_v33  ;;  %v356_v23 = vld [vmem:[%s1095_s12 + $0x98] sm:$0xff]  ;;  %v357_v30 = vld [vmem:[%s1095_s12 + $0xa0] sm:$0xff]  ;;  %v358_v37 = vld [vmem:[%s1095_s12 + $0xa8] sm:$0xff] }
  0x71   : > { %v476_v48 = vadd.f32 %v451_v31, %v399_v36  ;;  %v377_v51 = vmul.f32 %v1110_v5, %v350_v34  ;;  %v401_v54 = vadd.f32 %v376_v44, %v324_v43  ;;  %v454_v55 = vmul.f32 %v1116_v10, %v427_v39  ;;  %v434_v31 = vld [vmem:[%s1106_s15 + $0xa0] sm:$0xff]  ;;  %v306_v36 = vld [vmem:[%s1087_s7 + $0xa8] sm:$0xff]  ;;  %v307_v43 = vld [vmem:[%s1087_s7 + $0xb0] sm:$0xff] }
  0x72   : > { %500 = vst [vmem:[%s1152_s28 + $0x48] sm:$0xff] %v475_v42  ;;  %v326_v56 = vmul.f32 %v1102_v1, %v299_v40  ;;  %v378_v57 = vmul.f32 %v1110_v5, %v351_v41  ;;  %v477_v61 = vadd.f32 %v452_v38, %v400_v49  ;;  %v455_v63 = vmul.f32 %v1116_v10, %v428_v46  ;;  %v435_v42 = vld [vmem:[%s1106_s15 + $0xa8] sm:$0xff]  ;;  %v359_v44 = vld [vmem:[%s1095_s12 + $0xb0] sm:$0xff]  ;;  %v436_v49 = vld [vmem:[%s1106_s15 + $0xb0] sm:$0xff] }
  0x73   : > { %501 = vst [vmem:[%s1152_s28 + $0x50] sm:$0xff] %v476_v48  ;;  %v402_v62 = vadd.f32 %v377_v51, %v325_v50  ;;  %v327_v0 = vmul.f32 %v1102_v1, %v300_v47  ;;  %v478_v4 = vadd.f32 %v453_v45, %v401_v54  ;;  %v379_v7 = vmul.f32 %v1110_v5, %v352_v52  ;;  %v308_v50 = vld [vmem:[%s1087_s7 + $0xb8] sm:$0xff] }
  0x74   : > { %v403_v6 = vadd.f32 %v378_v57, %v326_v56  ;;  %v456_v8 = vmul.f32 %v1116_v10, %v429_v53  ;;  %502 = vst [vmem:[%s1152_s28 + $0x58] sm:$0xff] %v477_v61  ;;  %v328_v14 = vmul.f32 %v1102_v1, %v301_v58  ;;  %v380_v15 = vmul.f32 %v1110_v5, %v353_v59  ;;  %v437_v56 = vld [vmem:[%s1106_s15 + $0xb8] sm:$0xff]  ;;  %v309_v61 = vld [vmem:[%s1087_s7 + $0xc0] sm:$0xff] }
  0x75   : > { %v479_v13 = vadd.f32 %v454_v55, %v402_v62  ;;  %v457_v16 = vmul.f32 %v1116_v10, %v430_v60  ;;  %503 = vst [vmem:[%s1152_s28 + $0x60] sm:$0xff] %v478_v4  ;;  %v404_v20 = vadd.f32 %v379_v7, %v327_v0  ;;  %v329_v21 = vmul.f32 %v1102_v1, %v302_v2  ;;  %v360_v55 = vld [vmem:[%s1095_s12 + $0xb8] sm:$0xff]  ;;  %v361_v62 = vld [vmem:[%s1095_s12 + $0xc0] sm:$0xff] }
  0x76   : > { %v480_v19 = vadd.f32 %v455_v63, %v403_v6  ;;  %v381_v22 = vmul.f32 %v1110_v5, %v354_v3  ;;  %v405_v25 = vadd.f32 %v380_v15, %v328_v14  ;;  %v458_v26 = vmul.f32 %v1116_v10, %v431_v9  ;;  %v438_v63 = vld [vmem:[%s1106_s15 + $0xc0] sm:$0xff] }
  0x77   : > { %504 = vst [vmem:[%s1152_s28 + $0x68] sm:$0xff] %v479_v13  ;;  %v330_v27 = vmul.f32 %v1102_v1, %v303_v11  ;;  %v382_v28 = vmul.f32 %v1110_v5, %v355_v12  ;;  %v481_v32 = vadd.f32 %v456_v8, %v404_v20  ;;  %v459_v34 = vmul.f32 %v1116_v10, %v432_v17 }
  0x78   : > { %505 = vst [vmem:[%s1152_s28 + $0x70] sm:$0xff] %v480_v19  ;;  %v406_v33 = vadd.f32 %v381_v22, %v329_v21  ;;  %v331_v35 = vmul.f32 %v1102_v1, %v304_v18  ;;  %v482_v38 = vadd.f32 %v457_v16, %v405_v25  ;;  %v383_v40 = vmul.f32 %v1110_v5, %v356_v23 }
  0x79   : > { %v407_v39 = vadd.f32 %v382_v28, %v330_v27  ;;  %v460_v41 = vmul.f32 %v1116_v10, %v433_v24  ;;  %506 = vst [vmem:[%s1152_s28 + $0x78] sm:$0xff] %v481_v32  ;;  %v332_v46 = vmul.f32 %v1102_v1, %v305_v29  ;;  %v384_v47 = vmul.f32 %v1110_v5, %v357_v30 }
  0x7a   : > { %v483_v45 = vadd.f32 %v458_v26, %v406_v33  ;;  %v461_v48 = vmul.f32 %v1116_v10, %v434_v31  ;;  %507 = vst [vmem:[%s1152_s28 + $0x80] sm:$0xff] %v482_v38  ;;  %v408_v52 = vadd.f32 %v383_v40, %v331_v35  ;;  %v333_v53 = vmul.f32 %v1102_v1, %v306_v36 }
  0x7b   : > { %v484_v51 = vadd.f32 %v459_v34, %v407_v39  ;;  %v385_v54 = vmul.f32 %v1110_v5, %v358_v37  ;;  %v409_v57 = vadd.f32 %v384_v47, %v332_v46  ;;  %v462_v58 = vmul.f32 %v1116_v10, %v435_v42 }
  0x7c   : > { %508 = vst [vmem:[%s1152_s28 + $0x88] sm:$0xff] %v483_v45  ;;  %v334_v59 = vmul.f32 %v1102_v1, %v307_v43  ;;  %v386_v60 = vmul.f32 %v1110_v5, %v359_v44  ;;  %v485_v0 = vadd.f32 %v460_v41, %v408_v52  ;;  %v463_v3 = vmul.f32 %v1116_v10, %v436_v49 }
  0x7d   : > { %509 = vst [vmem:[%s1152_s28 + $0x90] sm:$0xff] %v484_v51  ;;  %v410_v2 = vadd.f32 %v385_v54, %v333_v53  ;;  %v335_v4 = vmul.f32 %v1102_v1, %v308_v50  ;;  %v486_v6 = vadd.f32 %v461_v48, %v409_v57  ;;  %v387_v8 = vmul.f32 %v1110_v5, %v360_v55 }
  0x7e   : > { %v411_v7 = vadd.f32 %v386_v60, %v334_v59  ;;  %v464_v9 = vmul.f32 %v1116_v10, %v437_v56  ;;  %510 = vst [vmem:[%s1152_s28 + $0x98] sm:$0xff] %v485_v0  ;;  %v336_v12 = vmul.f32 %v1102_v1, %v309_v61  ;;  %v388_v13 = vmul.f32 %v1110_v5, %v361_v62 }
  0x7f   : > { %v487_v11 = vadd.f32 %v462_v58, %v410_v2  ;;  %v465_v14 = vmul.f32 %v1116_v10, %v438_v63  ;;  %511 = vst [vmem:[%s1152_s28 + $0xa0] sm:$0xff] %v486_v6  ;;  %v412_v16 = vadd.f32 %v387_v8, %v335_v4 }
  0x80   : > { %v488_v15 = vadd.f32 %v463_v3, %v411_v7  ;;  %v413_v17 = vadd.f32 %v388_v13, %v336_v12 }
  0x81   : > { %512 = vst [vmem:[%s1152_s28 + $0xa8] sm:$0xff] %v487_v11  ;;  %v489_v18 = vadd.f32 %v464_v9, %v412_v16 }
  0x82   : > { %513 = vst [vmem:[%s1152_s28 + $0xb0] sm:$0xff] %v488_v15  ;;  %v490_v19 = vadd.f32 %v465_v14, %v413_v17 }
  0x83   : > { %514 = vst [vmem:[%s1152_s28 + $0xb8] sm:$0xff] %v489_v18 }
  0x84   : > { %515 = vst [vmem:[%s1152_s28 + $0xc0] sm:$0xff] %v490_v19 }
  0x85   : > { %858 = shalt.err (!%p855_p2)
}
  0x86   : > { %s908_s1 = smov 128   ;;  %s909_s16 = smov 8  }
  0x87   : > { %674 = dma.vmem_to_hbm [thread:$0]  (%p983_p10), %s530_s14, 3200, %s532_s17, %s517_s18, %s908_s1, %s908_s1, %s909_s16  }
  0x88 PF: > { %p691_p3 = scmp.ge.s32.totalorder %s903_s22, 2  ;;  %s546_s12 = sand.u32 1, %s891_s19  }
  0x89   : > { %s547_s23 = scalar_lea.sflag [#allocation6], %s546_s12 }
  0x8a   : > { %p687_p4 = pnand %p691_p3, %p987_p11 }
  0x8c   : > { %p688_p13 = pneg %p687_p4 }
  0x8e   : > { %886 = dma.done.wait (%p688_p13), %s547_s23, 3200  }
  0x8f   : > { %888 = vsyncadd (%p688_p13), %s547_s23, 4294964096  ;;  %s1339_s5 = sld [smem:[#allocation15_spill]]  ;;  %p28_p5 = scmp.ge.s32.totalorder %s963_s24, 6  }
  0x90   : > { %s1340_s19 = smov %s895_s20  ;;  %s1341_s20 = smov %s899_s21 }
  0x91   : > { %s1343_s22 = smov %s963_s24  ;;  %30 = sbr.rel (!%p28_p5) target bundleno = 14 (0xe), region = 101 }
  0x95   : > { %s1342_s21 = smov %s1339_s5 }
  0x96   :  { %553 = vsyncpa [#allocation5], 1 }
  0x97   :  { %555 = vsyncpa [#allocation5 + $0x1], 1 }
  0x98   :  { %556 = vsyncpa [#allocation8], 1 }
  0x99   :  { %558 = vsyncpa [#allocation8 + $0x1], 1 }
  0x9a   :  { %559 = vsyncpa [#allocation6], 1 }
  0x9b   :  { %561 = vsyncpa [#allocation6 + $0x1], 1 }

</bundles_post_ra>
